<compile_context>
chip_gen: v5e
topology: v5e:2x2
jax: 0.10.0
libtpu: 0.0.40
codegen_flags: <defaults>
</compile_context>

<pallas_src>
import functools

import jax
import jax.numpy as jnp
from jax import lax
from jax.experimental import pallas as pl
from jax.experimental.pallas import tpu as pltpu


def _conv_kernel(x_ref, w_ref, b_ref, m_ref, o_ref, *, H, W, C, OUT, K, B):
    """Processes B images per grid step.

    x_ref: (B, C, H*W)    input images, channels on sublanes, pixels on lanes
    w_ref: (OUT, K*K*C)   lane-dense weight matrix, col index = (ki*K+kj)*C + c
    b_ref: (OUT, 1)       bias column
    m_ref: (K*K, H*W)     0/1 boundary masks per tap
    o_ref: (B, OUT, H*W)  output images (lane-dense store)
    """
    p = K // 2
    HW = H * W

    w = w_ref[...].astype(jnp.float32)            # (OUT, K*K*C)
    b = b_ref[...].astype(jnp.float32)            # (OUT, 1)

    for bi in range(B):
        x = x_ref[bi].astype(jnp.float32)         # (C, HW)

        # Build im2col tap matrix T; row order = (tap, in-channel).
        # Each tap is a lane rotation (XLU) of the single loaded image plus a
        # cheap 0/1 boundary-mask multiply (VPU).  No in-kernel div/mod, no
        # re-loads of x.
        taps = []
        for ki in range(K):
            for kj in range(K):
                dy, dx = ki - p, kj - p
                s = dy * W + dx                   # flat pixel shift
                if s == 0:
                    taps.append(x)
                else:
                    t = pltpu.roll(x, shift=(-s) % HW, axis=1)
                    tap_idx = ki * K + kj
                    taps.append(t * m_ref[tap_idx:tap_idx + 1, :])  # (C,HW)*(1,HW)
        tmat = jnp.concatenate(taps, axis=0)      # (K*K*C, HW)

        # Whole contraction on the MXU; bias added on the (otherwise idle) VPU.
        acc = jnp.dot(w, tmat, preferred_element_type=jnp.float32) + b
        o_ref[bi] = acc.astype(o_ref.dtype)


def shallow_conv2d_pallas(x, weight, bias, images_per_step=None):
    """ShallowModule.forward: Conv2d(C->OUT, K, stride=1, padding=K//2).

    x:      (N, C, H, W)   NCHW (PyTorch layout)
    weight: (OUT, C, K, K) PyTorch Conv2d weight layout
    bias:   (OUT,)
    returns (N, OUT, H, W)
    """
    N, C, H, W = x.shape
    OUT, C2, K, K2 = weight.shape
    assert C2 == C and K2 == K
    assert K % 2 == 1, "odd kernel_size expected (padding = K//2 'same' conv)"
    p = K // 2
    HW = H * W
    assert HW % 128 == 0, "lane-dense layout assumes H*W multiple of 128"

    if images_per_step is None:
        # Batch images per grid step to amortize per-step overhead on the
        # single-TC v5e/v6e, but always keep >= 2 grid steps (when N >= 2) so
        # both v7x TensorCores get work under dimension_semantics="parallel".
        images_per_step = 1
        for cand in range(N, 0, -1):
            if N % cand == 0 and (N // cand) >= min(2, N):
                images_per_step = cand
                break
    assert N % images_per_step == 0
    B = images_per_step
    grid_n = N // B

    # Free reshape only: pixels flattened onto the lane axis.
    x_flat = x.reshape(N, C, HW)

    # (OUT, C, K, K) -> (OUT, K, K, C) -> (OUT, K*K*C): lane-dense weight
    # matrix whose column order matches the tap-matrix row order (tap, c).
    w2 = jnp.transpose(weight, (0, 2, 3, 1)).reshape(OUT, K * K * C)
    b_col = bias.reshape(OUT, 1)

    # Precomputed 0/1 boundary masks for each of the K*K taps (2D, lane-dense).
    q = jnp.arange(HW)
    row, col = q // W, q % W
    masks = []
    for ki in range(K):
        for kj in range(K):
            dy, dx = ki - p, kj - p
            valid = ((row + dy >= 0) & (row + dy < H) &
                     (col + dx >= 0) & (col + dx < W))
            masks.append(valid.astype(jnp.float32))
    mask_arr = jnp.stack(masks, axis=0)            # (K*K, HW)

    kernel = functools.partial(_conv_kernel, H=H, W=W, C=C, OUT=OUT, K=K, B=B)

    out_flat = pl.pallas_call(
        kernel,
        out_shape=jax.ShapeDtypeStruct((N, OUT, HW), x.dtype),
        grid_spec=pltpu.PrefetchScalarGridSpec(
            num_scalar_prefetch=0,
            grid=(grid_n,),
            in_specs=[
                pl.BlockSpec((B, C, HW), lambda n: (n, 0, 0)),
                pl.BlockSpec((OUT, K * K * C), lambda n: (0, 0)),
                pl.BlockSpec((OUT, 1), lambda n: (0, 0)),
                pl.BlockSpec((K * K, HW), lambda n: (0, 0)),
            ],
            out_specs=pl.BlockSpec((B, OUT, HW), lambda n: (n, 0, 0)),
        ),
        compiler_params=pltpu.CompilerParams(
            dimension_semantics=("parallel",)),
    )(x_flat, w2, b_col, mask_arr)

    return out_flat.reshape(N, OUT, H, W)


def shallow_conv2d_reference(x, weight, bias):
    """Pure-JAX reference mirroring the PyTorch Conv2d forward (stride=1)."""
    K = weight.shape[-1]
    p = K // 2
    out = lax.conv_general_dilated(
        x, weight, window_strides=(1, 1), padding=((p, p), (p, p)),
        dimension_numbers=("NCHW", "OIHW", "NCHW"))
    return out + bias.reshape(1, -1, 1, 1)


if __name__ == "__main__":
    # ShallowModule(in_chans=4, out_chans=32, kernel_size=3, stride=1)
    N, C_in, H, W = 2, 4, 16, 16          # x: (2, 4, 16, 16) NCHW
    C_out, K = 32, 3

    key = jax.random.PRNGKey(0)
    kx, kw, kb = jax.random.split(key, 3)
    x = jax.random.normal(kx, (N, C_in, H, W), jnp.float32)
    fan_in = float(C_in * K * K)
    weight = jax.random.normal(kw, (C_out, C_in, K, K), jnp.float32) / jnp.sqrt(fan_in)
    bias = jax.random.normal(kb, (C_out,), jnp.float32) * 0.1

    out = shallow_conv2d_pallas(x, weight, bias)
    out = jax.block_until_ready(out)

    ref = shallow_conv2d_reference(x, weight, bias)
    assert out.shape == (N, C_out, H, W)
    assert jnp.allclose(out, ref, atol=1e-4, rtol=1e-4), "mismatch vs reference"

    print("KERNEL_OK")
</pallas_src>

<mosaic_0001>
module attributes {stable_mosaic.version = 11 : i64} {
  func.func @_conv_kernel(%arg0: i32, %arg1: memref<1x4x256xf32, #tpu.memory_space<vmem>>, %arg2: memref<32x36xf32, #tpu.memory_space<vmem>>, %arg3: memref<32x1xf32, #tpu.memory_space<vmem>>, %arg4: memref<9x256xf32, #tpu.memory_space<vmem>>, %arg5: memref<1x32x256xf32, #tpu.memory_space<vmem>>) attributes {dimension_semantics = [#tpu.dimension_semantics<parallel>], iteration_bounds = array<i64: 2>, scalar_prefetch = 0 : i64, scratch_operands = 0 : i64, tpu.core_type = #tpu.core_type<tc>, window_params = [{transform_indices = @transform_0, window_bounds = array<i64: 1, 4, 256>}, {pipeline_mode = #tpu.pipeline_mode<synchronous>, transform_indices = @transform_1, window_bounds = array<i64: 32, 36>}, {pipeline_mode = #tpu.pipeline_mode<synchronous>, transform_indices = @transform_2, window_bounds = array<i64: 32, 1>}, {pipeline_mode = #tpu.pipeline_mode<synchronous>, transform_indices = @transform_3, window_bounds = array<i64: 9, 256>}, {transform_indices = @transform_4, window_bounds = array<i64: 1, 32, 256>}]} {
    %c0 = arith.constant 0 : index
    %c0_0 = arith.constant 0 : index
    %0 = vector.load %arg2[%c0, %c0_0] : memref<32x36xf32, #tpu.memory_space<vmem>>, vector<32x36xf32>
    %c0_1 = arith.constant 0 : index
    %c0_2 = arith.constant 0 : index
    %1 = vector.load %arg3[%c0_1, %c0_2] : memref<32x1xf32, #tpu.memory_space<vmem>>, vector<32x1xf32>
    %c0_3 = arith.constant 0 : index
    %c0_4 = arith.constant 0 : index
    %c0_5 = arith.constant 0 : index
    %2 = vector.load %arg1[%c0_3, %c0_4, %c0_5] : memref<1x4x256xf32, #tpu.memory_space<vmem>>, vector<1x4x256xf32>
    %3 = vector.shape_cast %2 : vector<1x4x256xf32> to vector<4x256xf32>
    %c17_i32 = arith.constant 17 : i32
    %4 = tpu.dynamic_rotate %3 by %c17_i32 dim 1 : vector<4x256xf32>, i32 -> vector<4x256xf32>
    %c0_6 = arith.constant 0 : index
    %c0_7 = arith.constant 0 : index
    %5 = vector.load %arg4[%c0_6, %c0_7] : memref<9x256xf32, #tpu.memory_space<vmem>>, vector<1x256xf32>
    %6 = vector.broadcast %5 : vector<1x256xf32> to vector<4x256xf32>
    %7 = arith.mulf %4, %6 : vector<4x256xf32>
    %c16_i32 = arith.constant 16 : i32
    %8 = tpu.dynamic_rotate %3 by %c16_i32 dim 1 : vector<4x256xf32>, i32 -> vector<4x256xf32>
    %c1 = arith.constant 1 : index
    %c0_8 = arith.constant 0 : index
    %9 = vector.load %arg4[%c1, %c0_8] : memref<9x256xf32, #tpu.memory_space<vmem>>, vector<1x256xf32>
    %10 = vector.broadcast %9 : vector<1x256xf32> to vector<4x256xf32>
    %11 = arith.mulf %8, %10 : vector<4x256xf32>
    %c15_i32 = arith.constant 15 : i32
    %12 = tpu.dynamic_rotate %3 by %c15_i32 dim 1 : vector<4x256xf32>, i32 -> vector<4x256xf32>
    %c2 = arith.constant 2 : index
    %c0_9 = arith.constant 0 : index
    %13 = vector.load %arg4[%c2, %c0_9] : memref<9x256xf32, #tpu.memory_space<vmem>>, vector<1x256xf32>
    %14 = vector.broadcast %13 : vector<1x256xf32> to vector<4x256xf32>
    %15 = arith.mulf %12, %14 : vector<4x256xf32>
    %c1_i32 = arith.constant 1 : i32
    %16 = tpu.dynamic_rotate %3 by %c1_i32 dim 1 : vector<4x256xf32>, i32 -> vector<4x256xf32>
    %c3 = arith.constant 3 : index
    %c0_10 = arith.constant 0 : index
    %17 = vector.load %arg4[%c3, %c0_10] : memref<9x256xf32, #tpu.memory_space<vmem>>, vector<1x256xf32>
    %18 = vector.broadcast %17 : vector<1x256xf32> to vector<4x256xf32>
    %19 = arith.mulf %16, %18 : vector<4x256xf32>
    %c255_i32 = arith.constant 255 : i32
    %20 = tpu.dynamic_rotate %3 by %c255_i32 dim 1 : vector<4x256xf32>, i32 -> vector<4x256xf32>
    %c5 = arith.constant 5 : index
    %c0_11 = arith.constant 0 : index
    %21 = vector.load %arg4[%c5, %c0_11] : memref<9x256xf32, #tpu.memory_space<vmem>>, vector<1x256xf32>
    %22 = vector.broadcast %21 : vector<1x256xf32> to vector<4x256xf32>
    %23 = arith.mulf %20, %22 : vector<4x256xf32>
    %c241_i32 = arith.constant 241 : i32
    %24 = tpu.dynamic_rotate %3 by %c241_i32 dim 1 : vector<4x256xf32>, i32 -> vector<4x256xf32>
    %c6 = arith.constant 6 : index
    %c0_12 = arith.constant 0 : index
    %25 = vector.load %arg4[%c6, %c0_12] : memref<9x256xf32, #tpu.memory_space<vmem>>, vector<1x256xf32>
    %26 = vector.broadcast %25 : vector<1x256xf32> to vector<4x256xf32>
    %27 = arith.mulf %24, %26 : vector<4x256xf32>
    %c240_i32 = arith.constant 240 : i32
    %28 = tpu.dynamic_rotate %3 by %c240_i32 dim 1 : vector<4x256xf32>, i32 -> vector<4x256xf32>
    %c7 = arith.constant 7 : index
    %c0_13 = arith.constant 0 : index
    %29 = vector.load %arg4[%c7, %c0_13] : memref<9x256xf32, #tpu.memory_space<vmem>>, vector<1x256xf32>
    %30 = vector.broadcast %29 : vector<1x256xf32> to vector<4x256xf32>
    %31 = arith.mulf %28, %30 : vector<4x256xf32>
    %c239_i32 = arith.constant 239 : i32
    %32 = tpu.dynamic_rotate %3 by %c239_i32 dim 1 : vector<4x256xf32>, i32 -> vector<4x256xf32>
    %c8 = arith.constant 8 : index
    %c0_14 = arith.constant 0 : index
    %33 = vector.load %arg4[%c8, %c0_14] : memref<9x256xf32, #tpu.memory_space<vmem>>, vector<1x256xf32>
    %34 = vector.broadcast %33 : vector<1x256xf32> to vector<4x256xf32>
    %35 = arith.mulf %32, %34 : vector<4x256xf32>
    %36 = tpu.concatenate %7, %11, %15, %19, %3, %23, %27, %31, %35 in 0 : vector<4x256xf32>, vector<4x256xf32>, vector<4x256xf32>, vector<4x256xf32>, vector<4x256xf32>, vector<4x256xf32>, vector<4x256xf32>, vector<4x256xf32>, vector<4x256xf32> -> vector<36x256xf32>
    %cst = arith.constant dense<0.000000e+00> : vector<32x256xf32>
    %37 = tpu.matmul %0, %36, %cst {dimension_numbers = #tpu.dot_dimension_numbers<[1], [0], [0], [1], [0, 0, 1, 1], [], []>} : vector<32x36xf32>, vector<36x256xf32>, vector<32x256xf32> -> vector<32x256xf32>
    %38 = vector.broadcast %1 : vector<32x1xf32> to vector<32x256xf32>
    %39 = arith.addf %37, %38 : vector<32x256xf32>
    %c0_15 = arith.constant 0 : index
    %c0_16 = arith.constant 0 : index
    %c0_17 = arith.constant 0 : index
    %40 = vector.load %arg5[%c0_15, %c0_16, %c0_17] : memref<1x32x256xf32, #tpu.memory_space<vmem>>, vector<1x32x256xf32>
    %41 = vector.shape_cast %40 : vector<1x32x256xf32> to vector<32x256xf32>
    %42 = vector.shape_cast %39 : vector<32x256xf32> to vector<1x32x256xf32>
    tpu.vector_store %arg5[%c0_15, %c0_16, %c0_17], %42 {strides = array<i32>} : memref<1x32x256xf32, #tpu.memory_space<vmem>>, vector<1x32x256xf32>,
    return
  }
  func.func @transform_0(%arg0: i32) -> (i32, i32, i32) {
    %c0_i32 = arith.constant 0 : i32
    %c0_i32_0 = arith.constant 0 : i32
    %c0_i32_1 = arith.constant 0 : i32
    return %arg0, %c0_i32, %c0_i32_0 : i32, i32, i32
  }
  func.func @transform_1(%arg0: i32) -> (i32, i32) {
    %c0_i32 = arith.constant 0 : i32
    %c0_i32_0 = arith.constant 0 : i32
    %c0_i32_1 = arith.constant 0 : i32
    return %c0_i32, %c0_i32_0 : i32, i32
  }
  func.func @transform_2(%arg0: i32) -> (i32, i32) {
    %c0_i32 = arith.constant 0 : i32
    %c0_i32_0 = arith.constant 0 : i32
    %c0_i32_1 = arith.constant 0 : i32
    return %c0_i32, %c0_i32_0 : i32, i32
  }
  func.func @transform_3(%arg0: i32) -> (i32, i32) {
    %c0_i32 = arith.constant 0 : i32
    %c0_i32_0 = arith.constant 0 : i32
    %c0_i32_1 = arith.constant 0 : i32
    return %c0_i32, %c0_i32_0 : i32, i32
  }
  func.func @transform_4(%arg0: i32) -> (i32, i32, i32) {
    %c0_i32 = arith.constant 0 : i32
    %c0_i32_0 = arith.constant 0 : i32
    %c0_i32_1 = arith.constant 0 : i32
    return %arg0, %c0_i32, %c0_i32_0 : i32, i32, i32
  }
}

</mosaic_0001>

<bundles_post_ra>
// kernel: tpu_custom_call.1
= control target key start
LH: loop header
LB: loop body
LE: loop exit
PB: predicated region body
PF: predicated region fallthrough
CT: control target
= control target key end

     0   :  { %9 = vsyncpa [#allocation3], 0  ;;  %s1180_s0 = inlined_call_operand.hbm [shape: f32[2,4,256], index: 0, kind: input, shape index: {}]   ;;  %s1181_s1 = inlined_call_operand.vmem [shape: f32[32,36], index: 1, kind: input, shape index: {}]   ;;  %s1182_s2 = inlined_call_operand.vmem [shape: f32[32,1], index: 2, kind: input, shape index: {}]   ;;  %s1183_s3 = inlined_call_operand.hbm [shape: f32[9,256], index: 3, kind: input, shape index: {}]   ;;  %s1184_s4 = inlined_call_operand.hbm [shape: f32[2,32,256], index: 4, kind: output, shape index: {}]  }
   0x1   :  { %11 = vsyncpa [#allocation3 + $0x1], 0 }
   0x2   :  { %12 = vsyncpa [#allocation6], 0 }
   0x3   :  { %13 = vsyncpa [#allocation4], 0 }
   0x4   :  { %15 = vsyncpa [#allocation4 + $0x1], 0  ;;  %s934_s15 = smov 0   ;;  %s936_s16 = smov 0  }
   0x5   :  { %s938_s17 = smov 0   ;;  %s940_s18 = smov 0  }
   0x6 LB: > { %s158_s21 = sshll.u32 %s1183_s3, 4  ;;  %s958_s22 = sadd.s32 4294967295, %s894_s18   ;;  %s894_s18 = sphi %s940_s18, %s1194_s18   ;;  %s890_s17 = sphi %s938_s17, %s1193_s17   ;;  %s886_s16 = sphi %s936_s16, %s1192_s16   ;;  %s882_s15 = sphi %s934_s15, %s1191_s15   ;;  %s159_s21 = int_to_ptr.hbm [resolvable:$true] %s158_s21 }
   0x7   : > { %p655_p0 = scmp.ge.s32.totalorder %s894_s18, 1  ;;  %p42_p1 = scmp.eq.s32.totalorder %s958_s22, 0 }
   0x8   : > { %p141_p2 = scmp.lt.s32.totalorder %s894_s18, 3  ;;  %s896_s24 = smov [#allocation5]  }
   0x9   : > { %s160_s25 = sshll.u32 %s896_s24, 4  ;;  %s897_s26 = smov 256   ;;  %s161_s25 = int_to_ptr.vmem [resolvable:$true] %s160_s25 }
   0xa   : > { %p963_p3 = pnand %p655_p0, %p141_p2  ;;  %s898_s27 = smov 16  }
   0xb   : > { %s654_s28 = sadd.s32 4294967294, %s894_s18   ;;  %s974_s29 = sadd.s32 1, %s894_s18  }
   0xc   : > { %p700_p4 = pneg %p963_p3  ;;  %s28_s30 = sadd.s32 1, %s890_s17 }
   0xd   : > { %s25_s5 = ssub.s32 %s894_s18, %s974_s29  ;;  %p35_p7 = scmp.ne.s32.totalorder %s890_s17, %s886_s16 }
   0xe   : > { %p701_p6 = pnand %p700_p4, %p42_p1  ;;  %p26_p8 = scmp.eq.s32.totalorder %s25_s5, 0 }
   0xf   : > { %p36_p9 = scmp.eq.s32.totalorder %s894_s18, 0  ;;  %p41_p10 = scmp.ne.s32.totalorder %s886_s16, %s882_s15 }
  0x10   : > { %703 = dma.hbm_to_vmem [thread:$0]  (!%p701_p6), %s159_s21, 512, %s161_s25, [#allocation6], %s897_s26, %s897_s26, %s898_s27  }
  0x11   : > { %p128_p11 = scmp.eq.s32.totalorder %s958_s22, 1  ;;  %p990_p12 = por %p42_p1, %p41_p10 }
  0x12   : > { %s986_s6 = scalar_select %p26_p8, %s890_s17, %s28_s30  }
  0x13   : > { %p994_p13 = por %p128_p11, %p35_p7  ;;  %p134_p0 = scmp.eq.s32.totalorder %s654_s28, 1 }
  0x14   : > { %p37_p2 = por %p36_p9, %p35_p7  ;;  %s174_s9 = sand.u32 1, %s890_s17  }
  0x15   : > { %p999_p4 = por %p134_p0, %p41_p10  ;;  %p713_p6 = scmp.lt.s32.totalorder %s894_s18, 2 }
  0x16   : > { %s658_s11 = sshll.u32 %s174_s9, 3  ;;  %s680_s12 = sshll.u32 %s894_s18, 3 }
  0x17   : > { %s183_s19 = scalar_lea.hbm %s1180_s0, %s680_s12  ;;  %s178_s21 = scalar_lea.vmem [#allocation2], %s658_s11 }
  0x18   : > { %s185_s20 = sshll.u32 %s183_s19, 4  ;;  %s187_s24 = sshll.u32 %s178_s21, 4  ;;  %s186_s20 = int_to_ptr.hbm [resolvable:$true] %s185_s20  ;;  %s188_s24 = int_to_ptr.vmem [resolvable:$true] %s187_s24 }
  0x19   : > { %p1008_p8 = pnand %p713_p6, %p37_p2  ;;  %s175_s26 = scalar_lea.sflag [#allocation3], %s174_s9 }
  0x1a   : > { %s794_s27 = sshra.s32 %s186_s20, 4  ;;  %s801_s11 = scalar_lea.hbm %s1180_s0, 16  ;;  %s795_s27 = int_to_ptr.hbm [resolvable:$true] %s794_s27 }
  0x1b   : > { %s796_s28 = scalar_lea.hbm %s795_s27, 8  ;;  %p798_p9 = pneg %p1008_p8 }
  0x1c   : > { %p797_p7 = scmp.ne.s32.totalorder %s795_s27, %s796_s28  ;;  %p802_p0 = scmp.lt.s32.totalorder %s795_s27, %s1180_s0 }
  0x1d   : > { %p803_p2 = scmp.lt.s32.totalorder %s801_s11, %s796_s28 }
  0x1e   : > { %p799_p10 = pnand %p798_p9, %p797_p7 }
  0x1f   : > { %p804_p6 = por %p803_p2, %p802_p0 }
  0x20   : > { %p800_p11 = pneg %p799_p10 }
  0x22   : > { %p805_p5 = pnand %p804_p6, %p800_p11 }
  0x24   : > { %808 = shalt.err (!%p805_p5)
}
  0x25   : > { %707 = dma.hbm_to_vmem [thread:$0]  (!%p1008_p8), %s186_s20, 128, %s188_s24, %s175_s26  }
  0x26   : > { %196 = sbr.rel (%p963_p3) target bundleno = 397 (0x18d), region = 36  ;;  %s1025_s9 = sand.u32 (!%p963_p3), 1, %s886_s16  }
  0x27   : > { %s662_s14 = sshll.u32 (!%p963_p3), %s1025_s9, 3  ;;  %s199_s19 = scalar_lea.sflag (!%p963_p3), [#allocation3], %s1025_s9 }
  0x28   : > { %s202_s21 = scalar_lea.vmem (!%p963_p3), [#allocation2], %s662_s14 }
  0x2b   : > { %869 = dma.done.wait (%p990_p12), %s199_s19, 128  }
  0x2c   : > { %871 = vsyncadd (%p990_p12), %s199_s19, 4294967168 }
  0x2d   : > { %873 = dma.done.wait (%p42_p1), [#allocation6], 512  }
  0x2e   : > { %875 = vsyncadd (%p42_p1), [#allocation6], 4294966784  ;;  %v241_v0 = vld [vmem:[%s202_s21] sm:$0xff]  ;;  %s899_s23 = smov 16   ;;  %s900_s7 = smov 15   ;;  %v252_v26 = vlaneseq  ;;  %v907_v27 = vmov 0  }
  0x2f   : > { %243 = vst [vmem:[#allocation1] ss:$2 sm:$0xff] %v241_v0  ;;  %s901_s20 = smov 1   ;;  %s902_s24 = smov 127   ;;  %761 = vset.pattern.permute.xlu1 %v907_v27  ;;  %763 = vset.pattern.permute.xlu0 %v907_v27  ;;  %v237_v36 = vld [vmem:[%s1182_s2] sm:$0xff]  ;;  %v239_v40 = vld [vmem:[%s1182_s2 + $0x10] sm:$0xff] }
  0x30   : > { %s903_s25 = smov 113   ;;  %s904_s26 = smov 112   ;;  %762 = vset.pattern.permute.xlu2 %v907_v27  ;;  %v1047_v28 = vand.u32 127, %v252_v26  ;;  %v383_v29 = vld [vmem:[#allocation5 + $0x7] ss:$8 sm:$0x3] }
  0x31   : > { %s905_s27 = smov 17   ;;  %s906_s28 = smov 111   ;;  %v1050_v30 = vld [vmem:[#allocation5 + $0x1] ss:$8 sm:$0x3]  ;;  %v385_v35 = vperm.slane %v383_v29, 0 }
  0x32   : > { %vm379_vm0 = vcmp.lt.s32.totalorder %v1047_v28, 112  ;;  %v341_v31 = vld [vmem:[#allocation5 + $0x5] ss:$8 sm:$0x3]  ;;  %vm337_vm1 = vcmp.lt.s32.totalorder %v1047_v28, 127  ;;  %v386_v38 = vperm.slane %v383_v29, 1 }
  0x33   : > { %v1052_v34 = vld [vmem:[#allocation5 + $0x3] ss:$8 sm:$0x3]  ;;  %v238_v41 = vld [vmem:[%s1182_s2 + $0x8] sm:$0xff]  ;;  %v280_v42 = vperm.slane %v1050_v30, 0  ;;  %v343_v43 = vperm.slane %v341_v31, 0 }
  0x34   : > { %v404_v45 = vld [vmem:[#allocation5 + $0x10] ss:$8 sm:$0x3]  ;;  %v322_v46 = vperm.slane %v1052_v34, 0  ;;  %v323_v47 = vperm.slane %v1052_v34, 1  ;;  %v344_v49 = vperm.slane %v341_v31, 1 }
  0x35   : > { %v362_v48 = vld [vmem:[#allocation5 + $0x6] ss:$8 sm:$0x3]  ;;  %vm316_vm2 = vcmp.lt.s32.totalorder %v1047_v28, 1  ;;  %vm358_vm3 = vcmp.lt.s32.totalorder %v1047_v28, 113  ;;  %vm400_vm4 = vcmp.lt.s32.totalorder %v1047_v28, 111 }
  0x36   : > { %v244_v1 = vld.sshfl [vmem:[#allocation1] sm:$0xff pattern:$0x75316420]  ;;  %v245_v2 = vld.sshfl [vmem:[#allocation1 + $0x8] sm:$0xff pattern:$0x75316420] }
  0x37   : > { %265 = vst [vmem:[#allocation1] ss:$2 sm:$0xff] %v241_v0  ;;  %v406_v54 = vperm.slane %v404_v45, 0  ;;  %v407_v55 = vperm.slane %v404_v45, 1  ;;  %vm274_vm5 = vcmp.lt.s32.totalorder %v1047_v28, 16  ;;  %v364_v56 = vperm.slane %v362_v48, 0 }
  0x38   : > { %v365_v57 = vperm.slane %v362_v48, 1  ;;  %v240_v59 = vld [vmem:[%s1182_s2 + $0x18] sm:$0xff]  ;;  %vm441_vm6 = vcmask 1043456   ;;  %vm254_vm7 = vcmp.lt.s32.totalorder %v1047_v28, 17  ;;  %vm295_vm8 = vcmp.lt.s32.totalorder %v1047_v28, 15  ;;  %s664_s5 = sshll.u32 %s1025_s9, 6 }
  0x39   : > { %vm470_vm9 = vcmask 293888   ;;  %s232_s11 = scalar_lea.vmem [#allocation7], %s664_s5  ;;  %s681_s12 = sshll.u32 %s958_s22, 6 }
  0x3a   : > { %s567_s19 = scalar_lea.hbm %s1184_s4, %s681_s12  ;;  %s568_s21 = sshll.u32 %s232_s11, 4  ;;  %s569_s21 = int_to_ptr.vmem [resolvable:$true] %s568_s21 }
  0x3b   : > { %s556_s22 = scalar_lea.sflag [#allocation4], %s1025_s9 }
  0x3e   : > { %v266_v3 = vld.sshfl [vmem:[#allocation1] sm:$0xff pattern:$0x75316420]  ;;  %v267_v4 = vld.sshfl [vmem:[#allocation1 + $0x8] sm:$0xff pattern:$0x75316420] }
  0x3f   : > { %286 = vst [vmem:[#allocation1] ss:$2 sm:$0xff] %v241_v0  ;;  %270 = vrot.lane.b32.xlu1 %v266_v3, %s899_s23  ;;  %272 = vrot.lane.b32.xlu2 %v267_v4, %s899_s23 }
  0x46   : > { %v287_v5 = vld.sshfl [vmem:[#allocation1] sm:$0xff pattern:$0x75316420]  ;;  %v288_v6 = vld.sshfl [vmem:[#allocation1 + $0x8] sm:$0xff pattern:$0x75316420] }
  0x47   : > { %291 = vrot.lane.b32.xlu0 %v287_v5, %s900_s7  ;;  %307 = vst [vmem:[#allocation1] ss:$2 sm:$0xff] %v241_v0 }
  0x4e   : > { %v308_v7 = vld.sshfl [vmem:[#allocation1] sm:$0xff pattern:$0x75316420]  ;;  %v309_v8 = vld.sshfl [vmem:[#allocation1 + $0x8] sm:$0xff pattern:$0x75316420] }
  0x4f   : > { %314 = vrot.lane.b32.xlu0 %v309_v8, %s901_s20  ;;  %328 = vst [vmem:[#allocation1] ss:$2 sm:$0xff] %v241_v0  ;;  %312 = vrot.lane.b32.xlu2 %v308_v7, %s901_s20 }
  0x56   : > { %v329_v9 = vld.sshfl [vmem:[#allocation1] sm:$0xff pattern:$0x75316420]  ;;  %v330_v10 = vld.sshfl [vmem:[#allocation1 + $0x8] sm:$0xff pattern:$0x75316420] }
  0x57   : > { %349 = vst [vmem:[#allocation1] ss:$2 sm:$0xff] %v241_v0  ;;  %333 = vrot.lane.b32.xlu2 %v329_v9, %s902_s24  ;;  %v281_v9 = vperm.slane %v1050_v30, 1 }
  0x5e   : > { %v350_v11 = vld.sshfl [vmem:[#allocation1] sm:$0xff pattern:$0x75316420]  ;;  %v351_v12 = vld.sshfl [vmem:[#allocation1 + $0x8] sm:$0xff pattern:$0x75316420] }
  0x5f   : > { %354 = vrot.lane.b32.xlu0 %v350_v11, %s903_s25  ;;  %356 = vrot.lane.b32.xlu1 %v351_v12, %s903_s25  ;;  %370 = vst [vmem:[#allocation1] ss:$2 sm:$0xff] %v241_v0 }
  0x60   : > { %335 = vrot.lane.b32.xlu2 %v330_v10, %s902_s24 }
  0x66   : > { %v371_v13 = vld.sshfl [vmem:[#allocation1] sm:$0xff pattern:$0x75316420]  ;;  %v372_v14 = vld.sshfl [vmem:[#allocation1 + $0x8] sm:$0xff pattern:$0x75316420] }
  0x67   : > { %375 = vrot.lane.b32.xlu0 %v371_v13, %s904_s26  ;;  %391 = vst [vmem:[#allocation1] ss:$2 sm:$0xff] %v241_v0  ;;  %v299_v13 = vld [vmem:[#allocation5 + $0x2] ss:$8 sm:$0x3] }
  0x68   : > { %248 = vrot.lane.b32.xlu2 %v244_v1, %s905_s27  ;;  %v301_v27 = vperm.slane %v299_v13, 0  ;;  %v302_v29 = vperm.slane %v299_v13, 1 }
  0x6e   : > { %v392_v15 = vld.sshfl [vmem:[#allocation1] sm:$0xff pattern:$0x75316420]  ;;  %v393_v16 = vld.sshfl [vmem:[#allocation1 + $0x8] sm:$0xff pattern:$0x75316420] }
  0x6f   : > { %377 = vrot.lane.b32.xlu0 %v372_v14, %s904_s26  ;;  %396 = vrot.lane.b32.xlu1 %v392_v15, %s906_s28  ;;  %424 = vst [vmem:[#allocation1] ss:$2 sm:$0xff] %v241_v0 }
  0x70   : > { %457 = vperm.xlu2 %762, %v238_v41  }
  0x77   : > { %250 = vrot.lane.b32.xlu0 %v245_v2, %s905_s27  ;;  %398 = vrot.lane.b32.xlu1 %v393_v16, %s906_s28  ;;  %s844_s27 = scalar_lea.hbm %s1184_s4, 128 }
  0x7f   : > { %293 = vrot.lane.b32.xlu1 %v288_v6, %s900_s7  ;;  %462 = vperm.xlu0 %763, %v239_v40   ;;  %v257_v6 = vld [vmem:[#allocation5] ss:$8 sm:$0x3]  ;;  %s570_s7 = sshll.u32 %s567_s19, 4  ;;  %s571_s7 = int_to_ptr.hbm [resolvable:$true] %s570_s7 }
  0x80   : > { %v260_v31 = vperm.slane %v257_v6, 1  ;;  %s838_s20 = sshra.s32 %s571_s7, 4  ;;  %s839_s20 = int_to_ptr.hbm [resolvable:$true] %s838_s20 }
  0x81   : > { %s840_s24 = scalar_lea.hbm %s839_s20, 64  ;;  %p845_p12 = scmp.lt.s32.totalorder %s839_s20, %s1184_s4 }
  0x82   : > { %p841_p1 = scmp.ne.s32.totalorder %s839_s20, %s840_s24  ;;  %p846_p8 = scmp.lt.s32.totalorder %s844_s27, %s840_s24 }
  0x84   : > { %p842_p3 = pnand %p841_p1, %p994_p13  ;;  %p847_p7 = por %p846_p8, %p845_p12 }
  0x86   : > { %p843_p5 = pneg %p842_p3 }
  0x87   : > { %452 = vperm.xlu1 %761, %v237_v36  }
  0x88   : > { %p848_p9 = pnand %p847_p7, %p843_p5 }
  0x8f   : > { %467 = vperm.xlu1 %761, %v240_v59  }
  0x99   : > { %v1043_v18 = vpop.permute.xlu2 %272 }
  0xa9   : > { %v313_v21 = vpop.permute.xlu2 %312 }
  0xb1   : > { %v1045_v20 = vpop.permute.xlu1 %270  ;;  %v334_v24 = vpop.permute.xlu2 %333 }
  0xb2   : > { %v275_v10 = vsel %vm274_vm5, %v1045_v20, %v1043_v18  ;;  %v276_v14 = vsel %vm274_vm5, %v1043_v18, %v1045_v20  ;;  %v426_v20 = vld.sshfl [vmem:[#allocation1 + $0x8] sm:$0xff pattern:$0x75316420] }
  0xb3   : > { %v284_v34 = vmul.f32 %v280_v42, %v276_v14 }
  0xb9   : > { %v1041_v17 = vpop.permute.xlu0 %291 }
  0xba   : > { %v336_v37 = vpop.permute.xlu2 %335 }
  0xbb   : > { %v338_v50 = vsel %vm337_vm1, %v334_v24, %v336_v37  ;;  %v339_v51 = vsel %vm337_vm1, %v336_v37, %v334_v24 }
  0xbc   : > { %v347_v58 = vmul.f32 %v343_v43, %v338_v50  ;;  %v348_v63 = vmul.f32 %v344_v49, %v339_v51  ;;  %v233_v51 = vld [vmem:[%s1181_s1] sm:$0xff] }
  0xbe   : > { %v431_v12 = vrot.slane %v347_v58, 4  ;;  %v432_v16 = vrot.slane %v348_v63, 4 }
  0xc0   : > { %v447_v37 = vsel %vm441_vm6, %v426_v20, %v432_v16 }
  0xc1   : > { %v315_v19 = vpop.permute.xlu0 %314 }
  0xc2   : > { %v317_v60 = vsel %vm316_vm2, %v313_v21, %v315_v19  ;;  %v318_v61 = vsel %vm316_vm2, %v315_v19, %v313_v21  ;;  %v249_v19 = vpop.permute.xlu2 %248 }
  0xc3   : > { %v327_v24 = vmul.f32 %v323_v47, %v317_v60 }
  0xc5   : > { %v421_v30 = vrot.slane %v327_v24, 4 }
  0xd1   : > { %v355_v22 = vpop.permute.xlu0 %354  ;;  %v357_v23 = vpop.permute.xlu1 %356 }
  0xd2   : > { %v359_v62 = vsel %vm358_vm3, %v355_v22, %v357_v23  ;;  %v360_v1 = vsel %vm358_vm3, %v357_v23, %v355_v22  ;;  %v425_v22 = vld.sshfl [vmem:[#allocation1] sm:$0xff pattern:$0x75316420]  ;;  %v326_v23 = vmul.f32 %v322_v46, %v318_v61  ;;  %v414_v46 = vrot.slane %v284_v34, 4 }
  0xd3   : > { %v368_v11 = vmul.f32 %v364_v56, %v359_v62  ;;  %v369_v15 = vmul.f32 %v365_v57, %v360_v1 }
  0xd9   : > { %v376_v25 = vpop.permute.xlu0 %375 }
  0xe1   : > { %v378_v32 = vpop.permute.xlu0 %377  ;;  %v397_v33 = vpop.permute.xlu1 %396 }
  0xe2   : > { %v380_v39 = vsel %vm379_vm0, %v376_v25, %v378_v32  ;;  %v381_v44 = vsel %vm379_vm0, %v378_v32, %v376_v25  ;;  %v259_v25 = vperm.slane %v257_v6, 0 }
  0xe3   : > { %v389_v52 = vmul.f32 %v385_v35, %v380_v39  ;;  %v390_v53 = vmul.f32 %v386_v38, %v381_v44  ;;  %v285_v38 = vmul.f32 %v281_v9, %v275_v10  ;;  %v420_v39 = vrot.slane %v326_v23, 4 }
  0xe5   : > { %v437_v2 = vrot.slane %v389_v52, 4  ;;  %v438_v5 = vrot.slane %v390_v53, 4  ;;  %v415_v49 = vrot.slane %v285_v38, 4  ;;  %v236_v52 = vld [vmem:[%s1181_s1 + $0x18] sm:$0xff]  ;;  %v234_v53 = vld [vmem:[%s1181_s1 + $0x8] sm:$0xff] }
  0xe7   : > { %v448_v18 = vsel %vm441_vm6, %v368_v11, %v437_v2  ;;  %v449_v26 = vsel %vm441_vm6, %v369_v15, %v438_v5 }
  0xe9   : > { %v399_v0 = vpop.permute.xlu1 %398  ;;  %v251_v21 = vpop.permute.xlu0 %250 }
  0xea   : > { %v401_v3 = vsel %vm400_vm4, %v397_v33, %v399_v0  ;;  %v402_v4 = vsel %vm400_vm4, %v399_v0, %v397_v33  ;;  %v256_v32 = vsel %vm254_vm7, %v251_v21, %v249_v19  ;;  %v446_v33 = vsel %vm441_vm6, %v425_v22, %v431_v12  ;;  %v458_v0 = vpop.permute.xlu2 %457 }
  0xeb   : > { %v410_v7 = vmul.f32 %v406_v54, %v401_v3  ;;  %v411_v8 = vmul.f32 %v407_v55, %v402_v4  ;;  %v255_v35 = vsel %vm254_vm7, %v249_v19, %v251_v21  ;;  %v263_v42 = vmul.f32 %v259_v25, %v256_v32 }
  0xec   : > { %v264_v45 = vmul.f32 %v260_v31, %v255_v35 }
  0xed   : > { %665 = vmatpush.msk.msra.mxu0 %vm441_vm6, %v410_v7  ;;  %682 = vmatpush.msk.msra.mxu2 %vm441_vm6, %v410_v7  ;;  %v442_v28 = vsel %vm441_vm6, %v263_v42, %v414_v46 }
  0xee   : > { %670 = vmatpush.msk.msra.mxu1 %vm441_vm6, %v411_v8  ;;  %687 = vmatpush.msk.msra.mxu3 %vm441_vm6, %v411_v8  ;;  %v443_v50 = vsel %vm441_vm6, %v264_v45, %v415_v49 }
  0xef   : > { %501 = vmatpush.msra.mxu0 %v448_v18  ;;  %683 = vmatpush.msra.mxu2 %v448_v18 }
  0xf0   : > { %530 = vmatpush.msra.mxu1 %v449_v26  ;;  %688 = vmatpush.msra.mxu3 %v449_v26 }
  0xf1   : > { %v294_v36 = vpop.permute.xlu1 %293  ;;  %502 = vmatpush.msra.mxu0 %v446_v33  ;;  %684 = vmatpush.msra.mxu2 %v446_v33  ;;  %v463_v59 = vpop.permute.xlu0 %462 }
  0xf2   : > { %v296_v40 = vsel %vm295_vm8, %v1041_v17, %v294_v36  ;;  %v297_v41 = vsel %vm295_vm8, %v294_v36, %v1041_v17  ;;  %531 = vmatpush.msra.mxu1 %v447_v37  ;;  %689 = vmatpush.msra.mxu3 %v447_v37  ;;  %v235_v17 = vld [vmem:[%s1181_s1 + $0x10] sm:$0xff] }
  0xf3   : > { %v305_v43 = vmul.f32 %v301_v27, %v297_v41  ;;  %v306_v44 = vmul.f32 %v302_v29, %v296_v40 }
  0xf5   : > { %v444_v47 = vsel %vm441_vm6, %v305_v43, %v420_v39  ;;  %v445_v48 = vsel %vm441_vm6, %v306_v44, %v421_v30 }
  0xf6   : > { %503 = vmatpush.msra.mxu0 %v444_v47  ;;  %685 = vmatpush.msra.mxu2 %v444_v47 }
  0xf7   : > { %532 = vmatpush.msra.mxu1 %v445_v48  ;;  %690 = vmatpush.msra.mxu3 %v445_v48 }
  0xf8   : > { %504 = vmatpush.msra.mxu0 %v442_v28  ;;  %686 = vmatpush.msra.mxu2 %v442_v28 }
  0xf9   : > { %533 = vmatpush.msra.mxu1 %v443_v50  ;;  %691 = vmatpush.msra.mxu3 %v443_v50  ;;  %v453_v54 = vpop.permute.xlu1 %452 }
  0xfa   : > { %668 = vmatmul.msk.f32.vlgmr.msra.gmra.mxu2 %vm470_vm9, %v235_v17  ;;  %673 = vmatmul.msk.f32.vlgmr.msra.gmra.mxu3 %vm470_vm9, %v235_v17 }
  0xfb   : > { %666 = vmatmul.msk.f32.vlgmr.msra.gmra.mxu0 %vm470_vm9, %v233_v51  ;;  %671 = vmatmul.msk.f32.vlgmr.msra.gmra.mxu1 %vm470_vm9, %v233_v51 }
 0x101   : > { %v468_v5 = vpop.permute.xlu1 %467 }
 0x102   : > { %669 = vmatmul.msk.f32.gmra.mxu2 %vm470_vm9, %v236_v52  ;;  %674 = vmatmul.msk.f32.gmra.mxu3 %vm470_vm9, %v236_v52 }
 0x103   : > { %667 = vmatmul.msk.f32.gmra.mxu0 %vm470_vm9, %v234_v53  ;;  %672 = vmatmul.msk.f32.gmra.mxu1 %vm470_vm9, %v234_v53 }
 0x178   : > { %v506_v55 = vpop.f32.mrf.mxu0  ;;  %v535_v56 = vpop.f32.mrf.mxu1 }
 0x179   : > { %v507_v57 = vadd.f32 %v506_v55, %v453_v54  ;;  %v536_v58 = vadd.f32 %v535_v56, %v453_v54 }
 0x17b   : > { %547 = vst [vmem:[%s232_s11] sm:$0xff] %v507_v57 }
 0x17c   : > { %548 = vst [vmem:[%s232_s11 + $0x8] sm:$0xff] %v536_v58 }
 0x17d   : > { %v512_v60 = vpop.f32.mrf.mxu2  ;;  %v541_v61 = vpop.f32.mrf.mxu3 }
 0x17e   : > { %v513_v62 = vadd.f32 %v512_v60, %v463_v59  ;;  %v542_v63 = vadd.f32 %v541_v61, %v463_v59 }
 0x180   : > { %551 = vst [vmem:[%s232_s11 + $0x20] sm:$0xff] %v513_v62  ;;  %v509_v1 = vpop.f32.mrf.mxu0  ;;  %v538_v2 = vpop.f32.mrf.mxu1 }
 0x181   : > { %552 = vst [vmem:[%s232_s11 + $0x28] sm:$0xff] %v542_v63  ;;  %v510_v3 = vadd.f32 %v509_v1, %v458_v0  ;;  %v539_v4 = vadd.f32 %v538_v2, %v458_v0 }
 0x183   : > { %549 = vst [vmem:[%s232_s11 + $0x10] sm:$0xff] %v510_v3 }
 0x184   : > { %550 = vst [vmem:[%s232_s11 + $0x18] sm:$0xff] %v539_v4 }
 0x185   : > { %v515_v6 = vpop.f32.mrf.mxu2  ;;  %v544_v7 = vpop.f32.mrf.mxu3 }
 0x186   : > { %v516_v8 = vadd.f32 %v515_v6, %v468_v5  ;;  %v545_v9 = vadd.f32 %v544_v7, %v468_v5 }
 0x188   : > { %553 = vst [vmem:[%s232_s11 + $0x30] sm:$0xff] %v516_v8 }
 0x189   : > { %554 = vst [vmem:[%s232_s11 + $0x38] sm:$0xff] %v545_v9 }
 0x18a   : > { %851 = shalt.err (!%p848_p9)
}
 0x18b   : > { %s908_s9 = smov 256  }
 0x18c   : > { %698 = dma.vmem_to_hbm [thread:$0]  (%p994_p13), %s569_s21, 1024, %s571_s7, %s556_s22, %s908_s9, %s908_s9, %s899_s23  }
 0x18d PF: > { %s585_s5 = sand.u32 1, %s882_s15   ;;  %p1190_p10 = scmp.ge.s32.totalorder %s894_s18, 2 }
 0x18e   : > { %s586_s11 = scalar_lea.sflag [#allocation4], %s585_s5 }
 0x18f   : > { %p709_p11 = pnand %p1190_p10, %p999_p4 }
 0x191   : > { %p710_p0 = pneg %p709_p11 }
 0x193   : > { %877 = dma.done.wait (%p710_p0), %s586_s11, 1024  }
 0x194   : > { %879 = vsyncadd (%p710_p0), %s586_s11, 4294966272  ;;  %p18_p2 = scmp.ge.s32.totalorder %s974_s29, 4   ;;  %s1191_s15 = smov %s886_s16 }
 0x195   : > { %s1192_s16 = smov %s890_s17  ;;  %s1193_s17 = smov %s986_s6 }
 0x196   : > { %s1194_s18 = smov %s974_s29  ;;  %20 = sbr.rel (!%p18_p2) target bundleno = 6 (0x6), region = 92 }
 0x19b   :  { %592 = vsyncpa [#allocation3], 1 }
 0x19c   :  { %594 = vsyncpa [#allocation3 + $0x1], 1 }
 0x19d   :  { %595 = vsyncpa [#allocation6], 1 }
 0x19e   :  { %596 = vsyncpa [#allocation4], 1 }
 0x19f   :  { %598 = vsyncpa [#allocation4 + $0x1], 1 }

</bundles_post_ra>
